<compile_context>
chip_gen: v7x
topology: tpu7x:2x2x1
jax: 0.10.0
libtpu: 0.0.40
codegen_flags: <defaults>
</compile_context>

<pallas_src>
import functools

import jax
import jax.numpy as jnp
from jax.experimental import pallas as pl
from jax.experimental.pallas import tpu as pltpu


def _linear_sigmoid_kernel(x_ref, wb_ref, o_ref, *, in_features):
    # x_ref: (B, IN); wb_ref: (IN+1, OUT) packed [W.T ; b]; o_ref: (B, OUT)
    x = x_ref[...]
    wt = wb_ref[:in_features, :]   # (IN, OUT) — static slice, no extra DMA
    b = wb_ref[in_features:, :]    # (1, OUT)  — static slice
    # MXU matmul with f32 accumulation; bias add + sigmoid on VPU/EUP.
    y = jnp.dot(x, wt, preferred_element_type=jnp.float32) + b
    o_ref[...] = jax.nn.sigmoid(y).astype(o_ref.dtype)


def pack_params(weight, bias):
    """One-time parameter prep (hoisted out of the per-call path).

    weight: (OUT, IN) f32 (PyTorch nn.Linear layout); bias: (OUT,) f32.
    Returns packed (IN+1, OUT) = [W.T ; b].
    """
    out_f, _ = weight.shape
    return jnp.concatenate([weight.T, bias.reshape(1, out_f)], axis=0)


def net_forward(x, wb_packed):
    """x: (B, IN) f32; wb_packed: (IN+1, OUT) f32 from pack_params()."""
    B, IN = x.shape
    OUT = wb_packed.shape[1]

    vmem = pltpu.MemorySpace.VMEM
    cost = pl.CostEstimate(
        flops=2 * B * IN * OUT,                                   # 512
        transcendentals=B * OUT,                                  # 16 (sigmoid)
        bytes_accessed=(B * IN + (IN + 1) * OUT + B * OUT) * 4,   # ~0.8 KiB
    )

    return pl.pallas_call(
        functools.partial(_linear_sigmoid_kernel, in_features=IN),
        out_shape=jax.ShapeDtypeStruct((B, OUT), x.dtype),
        in_specs=[
            pl.BlockSpec(memory_space=vmem),  # x, whole array in VMEM
            pl.BlockSpec(memory_space=vmem),  # packed [W.T ; b]
        ],
        out_specs=pl.BlockSpec(memory_space=vmem),
        cost_estimate=cost,
    )(x, wb_packed)


if __name__ == "__main__":
    key = jax.random.PRNGKey(0)
    kx, kw, kb = jax.random.split(key, 3)

    B, IN, OUT = 8, 16, 2

    # Deterministic parameter init (mimics nn.Linear's uniform(-1/sqrt(IN), 1/sqrt(IN)))
    bound = 1.0 / jnp.sqrt(jnp.float32(IN))
    weight = jax.random.uniform(kw, (OUT, IN), jnp.float32, -bound, bound)
    bias = jax.random.uniform(kb, (OUT,), jnp.float32, -bound, bound)

    x = jax.random.normal(kx, (B, IN), jnp.float32)

    # One-time packing (init-time), kept out of the forward path.
    wb_packed = jax.block_until_ready(pack_params(weight, bias))

    out = net_forward(x, wb_packed)
    out = jax.block_until_ready(out)

    # Reference check in plain JAX
    ref = jax.nn.sigmoid(x @ weight.T + bias)
    assert out.shape == (B, OUT)
    assert jnp.allclose(out, ref, atol=1e-5, rtol=1e-5)

    print("KERNEL_OK")
</pallas_src>

<mosaic_0001>
module attributes {stable_mosaic.version = 11 : i64} {
  func.func @_linear_sigmoid_kernel(%arg0: memref<8x16xf32, #tpu.memory_space<vmem>>, %arg1: memref<17x2xf32, #tpu.memory_space<vmem>>, %arg2: memref<8x2xf32, #tpu.memory_space<vmem>>) attributes {dimension_semantics = [], scalar_prefetch = 0 : i64, scratch_operands = 0 : i64, tpu.core_type = #tpu.core_type<tc>} {
    %c0 = arith.constant 0 : index
    %c0_0 = arith.constant 0 : index
    %0 = vector.load %arg0[%c0, %c0_0] : memref<8x16xf32, #tpu.memory_space<vmem>>, vector<8x16xf32>
    %c0_1 = arith.constant 0 : index
    %c0_2 = arith.constant 0 : index
    %1 = vector.load %arg1[%c0_1, %c0_2] : memref<17x2xf32, #tpu.memory_space<vmem>>, vector<16x2xf32>
    %c16 = arith.constant 16 : index
    %c0_3 = arith.constant 0 : index
    %2 = vector.load %arg1[%c16, %c0_3] : memref<17x2xf32, #tpu.memory_space<vmem>>, vector<1x2xf32>
    %cst = arith.constant dense<0.000000e+00> : vector<8x2xf32>
    %3 = tpu.matmul %0, %1, %cst {dimension_numbers = #tpu.dot_dimension_numbers<[1], [0], [0], [1], [0, 0, 1, 1], [], []>} : vector<8x16xf32>, vector<16x2xf32>, vector<8x2xf32> -> vector<8x2xf32>
    %4 = vector.broadcast %2 : vector<1x2xf32> to vector<8x2xf32>
    %5 = arith.addf %3, %4 : vector<8x2xf32>
    %6 = arith.negf %5 : vector<8x2xf32>
    %7 = math.exp %6 : vector<8x2xf32>
    %cst_4 = arith.constant 1.000000e+00 : f32
    %8 = vector.broadcast %cst_4 : f32 to vector<8x2xf32>
    %9 = arith.addf %8, %7 : vector<8x2xf32>
    %10 = arith.divf %8, %9 : vector<8x2xf32>
    %c0_5 = arith.constant 0 : index
    %c0_6 = arith.constant 0 : index
    %11 = vector.load %arg2[%c0_5, %c0_6] : memref<8x2xf32, #tpu.memory_space<vmem>>, vector<8x2xf32>
    tpu.vector_store %arg2[%c0_5, %c0_6], %10 {strides = array<i32>} : memref<8x2xf32, #tpu.memory_space<vmem>>, vector<8x2xf32>,
    return
  }
}

</mosaic_0001>

<bundles_post_ra>
// kernel: tpu_custom_call.1
= control target key start
LH: loop header
LB: loop body
LE: loop exit
PB: predicated region body
PF: predicated region fallthrough
CT: control target
= control target key end

     0   :  { %v128_v0 = vmov 0.0|0.0   ;;  %vm129_vm0 = vmmov 0   ;;  %v130_v3 = vmov 0.0   ;;  %vm19_vm1 = vcmask 130048   ;;  %s161_s1 = inlined_call_operand.vmem [shape: f32[17,2], index: 1, kind: input, shape index: {}]   ;;  %s162_s0 = inlined_call_operand.vmem [shape: f32[8,16], index: 0, kind: input, shape index: {}]   ;;  %s163_s2 = inlined_call_operand.vmem [shape: f32[8,2], index: 2, kind: output, shape index: {}]  }
   0x1   :  { %118 = vmatprep.subr.bf16.mxu0 %v128_v0  ;;  %v12_v1 = vld [vmem:[%s161_s1] sm:$0xff]  ;;  %v13_v2 = vld [vmem:[%s161_s1 + $0x8] sm:$0xff]  ;;  %115 = vmatprep.mubr.msk.f32.mxu0 %vm129_vm0, %v130_v3  ;;  %v105_v6 = vld [vmem:[%s161_s1 + $0x10] ss:$0 sm:$0xff]  ;;  %vm99_vm2 = vcmask 15360  }
   0x2   :  { %v119_v4 = vpack.c.bf16 %v13_v2, %v12_v1  ;;  %v11_v5 = vld [vmem:[%s162_s0] sm:$0xff] }
   0x4   :  { %120 = vmatpush3.bf16.msra.mxu0 %v119_v4 }
   0x7   :  { %116 = vmatmul.mubr.msk.f32.vlgmr.msra.gmra.mrb[0].mxu0 %vm19_vm1, %v11_v5 }
  0xda   :  { %v89_v7 = vpop.f32.mrb[0].mxu0 }
  0xdb   :  { %v90_v8 = vadd.f32 %v105_v6, %v89_v7  ;;  %v117_v9 = vpop.f32.mrb[1].mxu0 }
  0xdd   :  { %v107_v10 = vmul.f32 -1.442695, %v90_v8 }
  0xdf   :  { %124 = vpow2.f32 %v107_v10 }
  0xe9   :  { %v125_v11 = vpop.eup %124 }
  0xea   :  { %v96_v12 = vadd.f32 1.0, %v125_v11 }
  0xec   :  { %126 = vrcp.f32 %v96_v12 }
  0xf6   :  { %v127_v13 = vpop.eup %126 }
  0xf7   :  { %100 = vst.msk [vmem:[%s163_s2] sm:$0xff] %vm99_vm2, %v127_v13 }

</bundles_post_ra>
